<compile_context>
chip_gen: v7x
topology: tpu7x:2x2x1
jax: 0.10.0
libtpu: 0.0.40
codegen_flags: <defaults>
</compile_context>

<pallas_src>
import jax
import jax.numpy as jnp
from jax import lax
from jax.experimental import pallas as pl
from jax.experimental.pallas import tpu as pltpu


# ----------------------------- Pallas kernels -----------------------------

def _pre_kernel(w_ref, img_ref, b_ref, g_ref, rhs_ref):
    """Fused normal equations: G = W^T W, rhs = (image - b) @ W."""
    w = w_ref[...]                                  # (N, K) read once, VMEM-resident
    y = img_ref[...] - b_ref[...]                   # (1, N)  VPU, free under MXU work
    # Contract dim 0 of both operands -> W^T W without materializing W.T in HBM.
    g_ref[...] = lax.dot_general(w, w, (((0,), (0,)), ((), ())),
                                 preferred_element_type=jnp.float32)        # (K, K)
    rhs_ref[...] = lax.dot_general(y, w, (((1,), (0,)), ((), ())),
                                   preferred_element_type=jnp.float32)      # (1, K)


def _post_kernel(w_ref, mods_ref, b_ref, img_ref, ginv_ref, wcls_ref, bcls_ref,
                 prod_ref, preds_ref, mse_ref):
    """Fused: reconstruction MSE, implicit-gradient prod = G^{-1} W^T, classifier."""
    w = w_ref[...]                                  # (N, K)
    mods = mods_ref[...]                            # (1, K)
    # fitted = (W m + b) laid out as a lane-dense row: mods @ W^T + b  -> (1, N)
    fitted = lax.dot_general(mods, w, (((1,), (1,)), ((), ())),
                             preferred_element_type=jnp.float32) + b_ref[...]
    diff = fitted - img_ref[...]
    mse_ref[...] = jnp.mean(diff * diff).reshape(1, 1)
    # prod = G^{-1} W^T  (the (2/N) Hessian scalings cancel algebraically);
    # output last dim is N -> lane-dense, unmasked stores.
    prod_ref[...] = lax.dot_general(ginv_ref[...], w, (((1,), (1,)), ((), ())),
                                    preferred_element_type=jnp.float32)     # (K, N)
    # classifier linear layer: mods @ W_cls^T + b_cls                       # (1, C)
    preds_ref[...] = lax.dot_general(mods, wcls_ref[...], (((1,), (1,)), ((), ())),
                                     preferred_element_type=jnp.float32) + bcls_ref[...]


def _post_clean_kernel(w_ref, mods_ref, b_ref, img_ref, wcls_ref, bcls_ref,
                       preds_ref, mse_ref):
    """clean=True variant: no implicit-gradient product."""
    w = w_ref[...]
    mods = mods_ref[...]
    fitted = lax.dot_general(mods, w, (((1,), (1,)), ((), ())),
                             preferred_element_type=jnp.float32) + b_ref[...]
    diff = fitted - img_ref[...]
    mse_ref[...] = jnp.mean(diff * diff).reshape(1, 1)
    preds_ref[...] = lax.dot_general(mods, wcls_ref[...], (((1,), (1,)), ((), ())),
                                     preferred_element_type=jnp.float32) + bcls_ref[...]


# ----------------------------- pallas_call wrappers -----------------------------

def _full_spec(shape):
    nd = len(shape)
    return pl.BlockSpec(shape, lambda i, _nd=nd: (0,) * _nd)


_ARB = pltpu.CompilerParams(dimension_semantics=("arbitrary",))


def pallas_normal_eq(w, image_row, b_row):
    """w: (N, K), image_row/b_row: (1, N) -> (G (K, K), rhs (1, K))."""
    N, K = w.shape
    ce = pl.CostEstimate(flops=2 * N * K * K + 2 * N * K + N,
                         transcendentals=0,
                         bytes_accessed=4 * (N * K + 2 * N + K * K + K))
    return pl.pallas_call(
        _pre_kernel,
        grid=(1,),
        in_specs=[_full_spec((N, K)), _full_spec((1, N)), _full_spec((1, N))],
        out_specs=(_full_spec((K, K)), _full_spec((1, K))),
        out_shape=(jax.ShapeDtypeStruct((K, K), jnp.float32),
                   jax.ShapeDtypeStruct((1, K), jnp.float32)),
        compiler_params=_ARB,
        cost_estimate=ce,
    )(w, image_row, b_row)


def pallas_post(w, mods_row, b_row, image_row, ginv, w_cls, b_cls_row):
    """Fused post-solve work -> (prod (K, N), preds (1, C), mse (1, 1))."""
    N, K = w.shape
    C = w_cls.shape[0]
    ce = pl.CostEstimate(flops=2 * N * K + 3 * N + 2 * K * K * N + 2 * K * C,
                         transcendentals=0,
                         bytes_accessed=4 * (N * K + 2 * N + K + K * K
                                             + C * K + C + K * N + C + 1))
    return pl.pallas_call(
        _post_kernel,
        grid=(1,),
        in_specs=[_full_spec((N, K)), _full_spec((1, K)), _full_spec((1, N)),
                  _full_spec((1, N)), _full_spec((K, K)), _full_spec((C, K)),
                  _full_spec((1, C))],
        out_specs=(_full_spec((K, N)), _full_spec((1, C)), _full_spec((1, 1))),
        out_shape=(jax.ShapeDtypeStruct((K, N), jnp.float32),
                   jax.ShapeDtypeStruct((1, C), jnp.float32),
                   jax.ShapeDtypeStruct((1, 1), jnp.float32)),
        compiler_params=_ARB,
        cost_estimate=ce,
    )(w, mods_row, b_row, image_row, ginv, w_cls, b_cls_row)


def pallas_post_clean(w, mods_row, b_row, image_row, w_cls, b_cls_row):
    """clean=True: (preds (1, C), mse (1, 1))."""
    N, K = w.shape
    C = w_cls.shape[0]
    ce = pl.CostEstimate(flops=2 * N * K + 3 * N + 2 * K * C,
                         transcendentals=0,
                         bytes_accessed=4 * (N * K + 2 * N + K + C * K + 2 * C + 1))
    return pl.pallas_call(
        _post_clean_kernel,
        grid=(1,),
        in_specs=[_full_spec((N, K)), _full_spec((1, K)), _full_spec((1, N)),
                  _full_spec((1, N)), _full_spec((C, K)), _full_spec((1, C))],
        out_specs=(_full_spec((1, C)), _full_spec((1, 1))),
        out_shape=(jax.ShapeDtypeStruct((1, C), jnp.float32),
                   jax.ShapeDtypeStruct((1, 1), jnp.float32)),
        compiler_params=_ARB,
        cost_estimate=ce,
    )(w, mods_row, b_row, image_row, w_cls, b_cls_row)


# ----------------------------- Implicit.forward -----------------------------

def implicit_forward(x, params, clean=False, return_mse=False):
    """Forward pass of `Implicit` with a linear INR and a linear classifier."""
    W_inr = params["inr_w"]      # (N, K)
    b_inr = params["inr_b"]      # (1, N)
    W_cls = params["cls_w"]      # (num_classes, K)
    b_cls = params["cls_b"]      # (num_classes,)

    B, C, H, Wd = x.shape
    N, K = W_inr.shape
    assert B == 1 and C == 1 and H * Wd == N, "reference semantics require B=C=1"

    # image[0].view(1, -1)  ->  (1, N) lane-dense row of pixels
    image = x[0, 0].reshape(1, -1).astype(jnp.float32)

    # ----- ArgminLayer: inner modulation optimization -----
    # TODO(synk): the reference runs LBFGS (strong-Wolfe) for `inner_steps`; for a
    # linear INR the inner problem is quadratic, so the normal-equation minimizer
    # computed here (matmuls in Pallas + small K x K solve) is the exact fixed point.
    G, rhs = pallas_normal_eq(W_inr, image, b_inr)     # G = W^T W, rhs = (x - b) W

    if clean:
        mods = jnp.linalg.solve(G, rhs[0])             # (K,)  small dense solve (glue)
        preds_row, mse11 = pallas_post_clean(
            W_inr, mods.reshape(1, K), b_inr, image, W_cls, b_cls.reshape(1, -1))
        prod = None
    else:
        # One LU factorization gives both mods = G^{-1} rhs and G^{-1} itself.
        eye = jnp.eye(K, dtype=jnp.float32)
        sol = jnp.linalg.solve(G, jnp.concatenate([rhs.T, eye], axis=1))   # (K, 1+K)
        mods = sol[:, 0]                               # (K,)
        Ginv = sol[:, 1:]                              # (K, K)
        # prod = (-hess_yx^T @ hess_yy^{-1})^T simplifies to G^{-1} W^T (K, N);
        # the (2/N) factors cancel, computed lane-dense inside the fused kernel.
        prod, preds_row, mse11 = pallas_post(
            W_inr, mods.reshape(1, K), b_inr, image, Ginv, W_cls,
            b_cls.reshape(1, -1))

    preds = preds_row[0]                               # .squeeze() -> (num_classes,)
    mse = mse11[0, 0]

    if return_mse:
        return preds, mods, prod, mse
    return preds, mods, prod


# ----------------------------- main -----------------------------

if __name__ == "__main__":
    H = Wd = 16
    N = H * Wd           # 256 pixels per image
    K = 32               # inr.modul_features
    NUM_CLASSES = 10

    key = jax.random.PRNGKey(0)
    kx, kw, kb, kcw, kcb = jax.random.split(key, 5)

    # input signal, PyTorch NCHW layout (B=1, C=1 as the reference forward implies)
    x = jax.random.normal(kx, (1, 1, H, Wd), dtype=jnp.float32)

    params = {
        "inr_w": 0.1 * jax.random.normal(kw, (N, K), dtype=jnp.float32),
        "inr_b": 0.1 * jax.random.normal(kb, (1, N), dtype=jnp.float32),
        "cls_w": 0.1 * jax.random.normal(kcw, (NUM_CLASSES, K), dtype=jnp.float32),
        "cls_b": 0.1 * jax.random.normal(kcb, (NUM_CLASSES,), dtype=jnp.float32),
    }

    preds, mods, dvdx = implicit_forward(x, params, clean=False, return_mse=False)
    jax.block_until_ready((preds, mods, dvdx))

    assert preds.shape == (NUM_CLASSES,)
    assert mods.shape == (K,)
    assert dvdx.shape == (K, N)
    print("KERNEL_OK")
</pallas_src>

<mosaic_0001>
module attributes {stable_mosaic.version = 11 : i64} {
  func.func @_pre_kernel(%arg0: i32, %arg1: memref<256x32xf32, #tpu.memory_space<vmem>>, %arg2: memref<1x256xf32, #tpu.memory_space<vmem>>, %arg3: memref<1x256xf32, #tpu.memory_space<vmem>>, %arg4: memref<32x32xf32, #tpu.memory_space<vmem>>, %arg5: memref<1x32xf32, #tpu.memory_space<vmem>>) attributes {dimension_semantics = [#tpu.dimension_semantics<arbitrary>], iteration_bounds = array<i64: 1>, scalar_prefetch = 0 : i64, scratch_operands = 0 : i64, tpu.core_type = #tpu.core_type<tc>, window_params = [{pipeline_mode = #tpu.pipeline_mode<synchronous>, transform_indices = @transform_0, window_bounds = array<i64: 256, 32>}, {pipeline_mode = #tpu.pipeline_mode<synchronous>, transform_indices = @transform_1, window_bounds = array<i64: 1, 256>}, {pipeline_mode = #tpu.pipeline_mode<synchronous>, transform_indices = @transform_2, window_bounds = array<i64: 1, 256>}, {pipeline_mode = #tpu.pipeline_mode<synchronous>, transform_indices = @transform_3, window_bounds = array<i64: 32, 32>}, {pipeline_mode = #tpu.pipeline_mode<synchronous>, transform_indices = @transform_4, window_bounds = array<i64: 1, 32>}]} {
    %c0 = arith.constant 0 : index
    %c0_0 = arith.constant 0 : index
    %0 = vector.load %arg1[%c0, %c0_0] : memref<256x32xf32, #tpu.memory_space<vmem>>, vector<256x32xf32>
    %c0_1 = arith.constant 0 : index
    %c0_2 = arith.constant 0 : index
    %1 = vector.load %arg2[%c0_1, %c0_2] : memref<1x256xf32, #tpu.memory_space<vmem>>, vector<1x256xf32>
    %c0_3 = arith.constant 0 : index
    %c0_4 = arith.constant 0 : index
    %2 = vector.load %arg3[%c0_3, %c0_4] : memref<1x256xf32, #tpu.memory_space<vmem>>, vector<1x256xf32>
    %3 = arith.subf %1, %2 : vector<1x256xf32>
    %cst = arith.constant dense<0.000000e+00> : vector<32x32xf32>
    %4 = tpu.matmul %0, %0, %cst {dimension_numbers = #tpu.dot_dimension_numbers<[0], [0], [1], [1], [0, 1, 1, 1], [], []>} : vector<256x32xf32>, vector<256x32xf32>, vector<32x32xf32> -> vector<32x32xf32>
    %c0_5 = arith.constant 0 : index
    %c0_6 = arith.constant 0 : index
    %5 = vector.load %arg4[%c0_5, %c0_6] : memref<32x32xf32, #tpu.memory_space<vmem>>, vector<32x32xf32>
    tpu.vector_store %arg4[%c0_5, %c0_6], %4 {strides = array<i32>} : memref<32x32xf32, #tpu.memory_space<vmem>>, vector<32x32xf32>,
    %cst_7 = arith.constant dense<0.000000e+00> : vector<1x32xf32>
    %6 = tpu.matmul %3, %0, %cst_7 {dimension_numbers = #tpu.dot_dimension_numbers<[1], [0], [0], [1], [0, 0, 1, 1], [], []>} : vector<1x256xf32>, vector<256x32xf32>, vector<1x32xf32> -> vector<1x32xf32>
    %c0_8 = arith.constant 0 : index
    %c0_9 = arith.constant 0 : index
    %7 = vector.load %arg5[%c0_8, %c0_9] : memref<1x32xf32, #tpu.memory_space<vmem>>, vector<1x32xf32>
    tpu.vector_store %arg5[%c0_8, %c0_9], %6 {strides = array<i32>} : memref<1x32xf32, #tpu.memory_space<vmem>>, vector<1x32xf32>,
    return
  }
  func.func @transform_0(%arg0: i32) -> (i32, i32) {
    %c0_i32 = arith.constant 0 : i32
    %c0_i32_0 = arith.constant 0 : i32
    %c0_i32_1 = arith.constant 0 : i32
    return %c0_i32, %c0_i32_0 : i32, i32
  }
  func.func @transform_1(%arg0: i32) -> (i32, i32) {
    %c0_i32 = arith.constant 0 : i32
    %c0_i32_0 = arith.constant 0 : i32
    %c0_i32_1 = arith.constant 0 : i32
    return %c0_i32, %c0_i32_0 : i32, i32
  }
  func.func @transform_2(%arg0: i32) -> (i32, i32) {
    %c0_i32 = arith.constant 0 : i32
    %c0_i32_0 = arith.constant 0 : i32
    %c0_i32_1 = arith.constant 0 : i32
    return %c0_i32, %c0_i32_0 : i32, i32
  }
  func.func @transform_3(%arg0: i32) -> (i32, i32) {
    %c0_i32 = arith.constant 0 : i32
    %c0_i32_0 = arith.constant 0 : i32
    %c0_i32_1 = arith.constant 0 : i32
    return %c0_i32, %c0_i32_0 : i32, i32
  }
  func.func @transform_4(%arg0: i32) -> (i32, i32) {
    %c0_i32 = arith.constant 0 : i32
    %c0_i32_0 = arith.constant 0 : i32
    %c0_i32_1 = arith.constant 0 : i32
    return %c0_i32, %c0_i32_0 : i32, i32
  }
}

</mosaic_0001>

<bundles_post_ra>
// kernel: tpu_custom_call.1
= control target key start
LH: loop header
LB: loop body
LE: loop exit
PB: predicated region body
PF: predicated region fallthrough
CT: control target
= control target key end

     0   :  { %10 = vsyncpa [#allocation3], 0  ;;  %v208_v23 = vlaneseq  ;;  %s746_s0 = inlined_call_operand.vmem [shape: f32[256,32], index: 0, kind: input, shape index: {}]   ;;  %s747_s1 = inlined_call_operand.vmem [shape: f32[1,256], index: 1, kind: input, shape index: {}]   ;;  %s748_s2 = inlined_call_operand.vmem [shape: f32[1,256], index: 2, kind: input, shape index: {}]   ;;  %s749_s3 = inlined_call_operand.hbm [shape: f32[32,32], index: 3, kind: output, shape index: {0}]   ;;  %s750_s4 = inlined_call_operand.hbm [shape: f32[1,32], index: 4, kind: output, shape index: {1}]  }
   0x1   :  { %v18_v0 = vld [vmem:[%s746_s0] sm:$0xff]  ;;  %v19_v2 = vld [vmem:[%s746_s0 + $0x8] sm:$0xff]  ;;  %v36_v6 = vld [vmem:[%s746_s0 + $0x90] sm:$0xff] }
   0x2   :  { %v34_v1 = vld [vmem:[%s746_s0 + $0x80] sm:$0xff]  ;;  %v35_v4 = vld [vmem:[%s746_s0 + $0x88] sm:$0xff]  ;;  %v401_v5 = vpack.c.bf16 %v19_v2, %v18_v0  ;;  %v37_v7 = vld [vmem:[%s746_s0 + $0x98] sm:$0xff] }
   0x3   :  { %v467_v3 = vpack.i.bf16 %v18_v0, %v34_v1  ;;  %v399_v8 = vpack.c.bf16 %v35_v4, %v34_v1  ;;  %v469_v9 = vpack.i.bf16 %v19_v2, %v35_v4  ;;  %v403_v10 = vpack.c.bf16 %v37_v7, %v36_v6  ;;  %v20_v11 = vld [vmem:[%s746_s0 + $0x10] sm:$0xff]  ;;  %v21_v12 = vld [vmem:[%s746_s0 + $0x18] sm:$0xff]  ;;  %v38_v14 = vld [vmem:[%s746_s0 + $0xa0] sm:$0xff] }
   0x4   :  { %v405_v13 = vpack.c.bf16 %v21_v12, %v20_v11  ;;  %v626_v15 = vld [vmem:[%s746_s0 + $0xa8] sm:$0xff]  ;;  %v471_v17 = vpack.i.bf16 %v20_v11, %v36_v6  ;;  %v22_v18 = vld [vmem:[%s746_s0 + $0x20] sm:$0xff]  ;;  %v638_v21 = vld [vmem:[%s746_s0 + $0xb0] sm:$0xff] }
   0x5   :  { %468 = vxpose.xlu0.b32.start [1/16] (narrow) %v467_v3, 32  ;;  %400 = vmatprep.subr.bf16.mxu0 %v399_v8  ;;  %v407_v16 = vpack.c.bf16 %v626_v15, %v38_v14  ;;  %v23_v19 = vld [vmem:[%s746_s0 + $0x28] sm:$0xff]  ;;  %v643_v22 = vld [vmem:[%s746_s0 + $0xb8] sm:$0xff] }
   0x6   :  { %402 = vmatpush3.bf16.msra.mxu0 %v401_v5  ;;  %432 = vmatprep.subr.bf16.mxu1 %v399_v8  ;;  %v409_v20 = vpack.c.bf16 %v23_v19, %v22_v18  ;;  %v411_v24 = vpack.c.bf16 %v643_v22, %v638_v21 }
   0x7   :  { %404 = vmatprep.subr.bf16.mxu0 %v403_v10  ;;  %434 = vmatpush3.bf16.msra.mxu1 %v401_v5 }
   0x8   :  { %436 = vmatprep.subr.bf16.mxu1 %v403_v10 }
   0x9   :  { %470 = vxpose.xlu0.b32.cont [2/16] (narrow) %v469_v9, 32 }
   0xa   :  { %406 = vmatpush3.bf16.msra.mxu0 %v405_v13 }
   0xb   :  { %408 = vmatprep.subr.bf16.mxu0 %v407_v16  ;;  %438 = vmatpush3.bf16.msra.mxu1 %v405_v13 }
   0xc   :  { %11 = vsyncpa [#allocation5], 0  ;;  %v473_v25 = vpack.i.bf16 %v21_v12, %v37_v7  ;;  %v24_v26 = vld [vmem:[%s746_s0 + $0x30] sm:$0xff]  ;;  %440 = vmatprep.subr.bf16.mxu1 %v407_v16  ;;  %v650_v27 = vshrl.u32 %v208_v23, 7  ;;  %v25_v28 = vld [vmem:[%s746_s0 + $0x38] sm:$0xff]  ;;  %v475_v37 = vpack.i.bf16 %v22_v18, %v38_v14  ;;  %v477_v45 = vpack.i.bf16 %v23_v19, %v626_v15 }
   0xd   :  { %472 = vxpose.xlu0.b32.cont [3/16] (narrow) %v471_v17, 32  ;;  %v50_v29 = vld [vmem:[%s747_s1] sm:$0x3]  ;;  %v413_v31 = vpack.c.bf16 %v25_v28, %v24_v26  ;;  %v667_v33 = vld [vmem:[%s746_s0 + $0xc8] sm:$0xff]  ;;  %v44_v42 = vld [vmem:[%s746_s0 + $0xd0] sm:$0xff]  ;;  %v479_v52 = vpack.i.bf16 %v24_v26, %v638_v21  ;;  %v481_v59 = vpack.i.bf16 %v25_v28, %v643_v22  ;;  %vm288_vm0 = vcmask 253952  }
   0xe   :  { %v51_v30 = vld [vmem:[%s748_s2] sm:$0x3]  ;;  %410 = vmatpush3.bf16.msra.mxu0 %v409_v20  ;;  %v214_v35 = vsub.s32 1, %v650_v27  ;;  %v27_v40 = vld [vmem:[%s746_s0 + $0x48] sm:$0xff]  ;;  %v45_v43 = vld [vmem:[%s746_s0 + $0xd8] sm:$0xff]  ;;  %v210_v63 = vsub.s32 0, %v650_v27 }
   0xf   :  { %v42_v32 = vld [vmem:[%s746_s0 + $0xc0] sm:$0xff]  ;;  %v52_v34 = vsub.f32 %v50_v29, %v51_v30  ;;  %412 = vmatprep.subr.bf16.mxu0 %v411_v24  ;;  %442 = vmatpush3.bf16.msra.mxu1 %v409_v20  ;;  %v419_v44 = vpack.c.bf16 %v45_v43, %v44_v42  ;;  %v28_v46 = vld [vmem:[%s746_s0 + $0x50] sm:$0xff]  ;;  %v29_v47 = vld [vmem:[%s746_s0 + $0x58] sm:$0xff]  ;;  %v485_v2 = vpack.i.bf16 %v27_v40, %v667_v33 }
  0x10   :  { %v415_v36 = vpack.c.bf16 %v667_v33, %v42_v32  ;;  %444 = vmatprep.subr.bf16.mxu1 %v411_v24  ;;  %v26_v39 = vld [vmem:[%s746_s0 + $0x40] sm:$0xff]  ;;  %v421_v48 = vpack.c.bf16 %v29_v47, %v28_v46  ;;  %v47_v50 = vld [vmem:[%s746_s0 + $0xe8] sm:$0xff]  ;;  %v48_v56 = vld [vmem:[%s746_s0 + $0xf0] sm:$0xff]  ;;  %v487_v3 = vpack.i.bf16 %v28_v46, %v44_v42  ;;  %v489_v4 = vpack.i.bf16 %v29_v47, %v45_v43 }
  0x11   :  { %474 = vxpose.xlu0.b32.cont [4/16] (narrow) %v473_v25, 32  ;;  %v215_v38 = vrot.slane %v52_v34, %v214_v35  ;;  %v417_v41 = vpack.c.bf16 %v27_v40, %v26_v39  ;;  %v46_v49 = vld [vmem:[%s746_s0 + $0xe0] sm:$0xff]  ;;  %v31_v54 = vld [vmem:[%s746_s0 + $0x68] sm:$0xff]  ;;  %v49_v57 = vld [vmem:[%s746_s0 + $0xf8] sm:$0xff]  ;;  %v483_v0 = vpack.i.bf16 %v26_v39, %v42_v32  ;;  %v211_v1 = vrot.slane %v52_v34, %v210_v63 }
  0x12   :  { %414 = vmatpush3.bf16.msra.mxu0 %v413_v31  ;;  %v423_v51 = vpack.c.bf16 %v47_v50, %v46_v49  ;;  %v30_v53 = vld [vmem:[%s746_s0 + $0x60] sm:$0xff]  ;;  %v427_v58 = vpack.c.bf16 %v49_v57, %v48_v56  ;;  %v32_v60 = vld [vmem:[%s746_s0 + $0x70] sm:$0xff]  ;;  %v33_v61 = vld [vmem:[%s746_s0 + $0x78] sm:$0xff]  ;;  %v493_v6 = vpack.i.bf16 %v31_v54, %v47_v50  ;;  %s567_s0 = smov [#allocation4]  }
  0x13   :  { %282 = vmatprep.mubr.f32.mxu1 %v215_v38  ;;  %416 = vmatprep.subr.bf16.mxu0 %v415_v36  ;;  %v425_v55 = vpack.c.bf16 %v31_v54, %v30_v53  ;;  %v429_v62 = vpack.c.bf16 %v33_v61, %v32_v60  ;;  %v491_v5 = vpack.i.bf16 %v30_v53, %v46_v49  ;;  %s308_s1 = sshll.u32 %s567_s0, 4  ;;  %s309_s1 = int_to_ptr.vmem [resolvable:$true] %s308_s1 }
  0x14   :  { %446 = vmatpush3.bf16.msra.mxu1 %v413_v31  ;;  %v495_v7 = vpack.i.bf16 %v32_v60, %v48_v56  ;;  %v497_v8 = vpack.i.bf16 %v33_v61, %v49_v57  ;;  %s519_s2 = scalar_lea.vmem %s309_s1, 16  ;;  %s523_s29 = scalar_lea.vmem %s309_s1, 32 }
  0x15   :  { %476 = vxpose.xlu0.b32.cont [5/16] (narrow) %v475_v37, 32  ;;  %448 = vmatprep.subr.bf16.mxu1 %v415_v36  ;;  %p520_p0 = scmp.ne.s32.totalorder %s309_s1, %s519_s2  ;;  %p524_p1 = scmp.lt.s32.totalorder %s309_s1, %s309_s1 }
  0x16   :  { %418 = vmatpush3.bf16.msra.mxu0 %v417_v41  ;;  %p525_p2 = scmp.lt.s32.totalorder %s523_s29, %s519_s2 }
  0x17   :  { %420 = vmatprep.subr.bf16.mxu0 %v419_v44 }
  0x18   :  { %450 = vmatpush3.bf16.msra.mxu1 %v417_v41  ;;  %p526_p3 = por %p525_p2, %p524_p1 }
  0x19   :  { %478 = vxpose.xlu0.b32.cont [6/16] (narrow) %v477_v45, 32  ;;  %452 = vmatprep.subr.bf16.mxu1 %v419_v44 }
  0x1a   :  { %422 = vmatpush3.bf16.msra.mxu0 %v421_v48  ;;  %p527_p4 = pnand %p526_p3, %p520_p0 }
  0x1b   :  { %424 = vmatprep.subr.bf16.mxu0 %v423_v51 }
  0x1c   :  { %454 = vmatpush3.bf16.msra.mxu1 %v421_v48 }
  0x1d   :  { %480 = vxpose.xlu0.b32.cont [7/16] (narrow) %v479_v52, 32  ;;  %456 = vmatprep.subr.bf16.mxu1 %v423_v51 }
  0x1e   :  { %426 = vmatpush3.bf16.msra.mxu0 %v425_v55 }
  0x1f   :  { %428 = vmatprep.subr.bf16.mxu0 %v427_v58 }
  0x20   :  { %458 = vmatpush3.bf16.msra.mxu1 %v425_v55 }
  0x21   :  { %482 = vxpose.xlu0.b32.cont [8/16] (narrow) %v481_v59, 32  ;;  %460 = vmatprep.subr.bf16.mxu1 %v427_v58 }
  0x22   :  { %430 = vmatpush3.bf16.msra.mxu0 %v429_v62 }
  0x24   :  { %462 = vmatpush3.bf16.msra.mxu1 %v429_v62 }
  0x25   :  { %484 = vxpose.xlu0.b32.cont [9/16] (narrow) %v483_v0, 32 }
  0x27   :  { %283 = vmatmul.mubr.f32.vlgmr.msra.gmra.mrb[0].mxu1 %v211_v1 }
  0x29   :  { %486 = vxpose.xlu0.b32.cont [10/16] (narrow) %v485_v2, 32 }
  0x2d   :  { %488 = vxpose.xlu0.b32.cont [11/16] (narrow) %v487_v3, 32 }
  0x31   :  { %490 = vxpose.xlu0.b32.cont [12/16] (narrow) %v489_v4, 32 }
  0x35   :  { %492 = vxpose.xlu0.b32.cont [13/16] (narrow) %v491_v5, 32 }
  0x39   :  { %494 = vxpose.xlu0.b32.cont [14/16] (narrow) %v493_v6, 32 }
  0x3d   :  { %496 = vxpose.xlu0.b32.cont [15/16] (narrow) %v495_v7, 32 }
  0x41   :  { %498 = vxpose.xlu0.b32.end [16/16] (narrow) %v497_v8, 32 }
  0x85   :  { %v499_v9 = vpop.trf.xlu0 }
  0x86   :  { %v500_v10 = vunpack.i.l.bf16 %v499_v9  ;;  %v503_v11 = vunpack.i.h.bf16 %v499_v9 }
  0x88   :  { %181 = vmatprep.mubr.f32.mxu0 %v500_v10 }
  0x89   :  { %v504_v12 = vpop.trf.xlu0  ;;  %182 = vmatmul.mubr.f32.vlgmr.msra.gmra.mrb[0].mxu0 %v503_v11 }
  0x8a   :  { %v505_v13 = vunpack.i.l.bf16 %v504_v12  ;;  %v508_v14 = vunpack.i.h.bf16 %v504_v12 }
  0x8c   :  { %186 = vmatprep.mubr.f32.mxu0 %v505_v13 }
  0x8d   :  { %v509_v15 = vpop.trf.xlu0  ;;  %187 = vmatmul.mubr.f32.gmra.mrb[2].mxu0 %v508_v14 }
  0x8e   :  { %v510_v16 = vunpack.i.l.bf16 %v509_v15  ;;  %v513_v17 = vunpack.i.h.bf16 %v509_v15 }
  0x90   :  { %191 = vmatprep.mubr.f32.mxu0 %v510_v16 }
  0x91   :  { %v514_v18 = vpop.trf.xlu0  ;;  %192 = vmatmul.mubr.f32.gmra.mrb[4].mxu0 %v513_v17 }
  0x92   :  { %v518_v19 = vunpack.i.h.bf16 %v514_v18  ;;  %v515_v20 = vunpack.i.l.bf16 %v514_v18 }
  0x94   :  { %196 = vmatprep.mubr.f32.mxu0 %v515_v20 }
  0x95   :  { %197 = vmatmul.mubr.f32.gmra.mrb[6].mxu0 %v518_v19 }
  0xfa   :  { %v396_v21 = vpop.f32.mrb[0].mxu1 }
  0xfb   :  { %v397_v22 = vpop.f32.mrb[1].mxu1 }
  0xfc   :  { %v398_v23 = vadd.f32 %v397_v22, %v396_v21 }
  0xfe   :  { %289 = vst.msk [vmem:[#allocation4] sm:$0x1] %vm288_vm0, %v398_v23 }
  0xff   :  { %530 = shalt.err (!%p527_p4)
}
 0x100   :  { %s531_s6 = scalar_lea.hbm %s750_s4, 16 }
 0x101   :  { %p532_p5 = scmp.ne.s32.totalorder %s750_s4, %s531_s6  ;;  %p535_p6 = scmp.lt.u32.totalorder %s531_s6, %s750_s4 }
 0x103   :  { %p537_p7 = pnand %p535_p6, %p532_p5 }
 0x105   :  { %540 = shalt.err (!%p537_p7)
}
 0x106   :  { %311 = dma.vmem_to_hbm [thread:$0]  %s309_s1, 16, %s750_s4, [#allocation5]   ;;  %vm202_vm1 = vcmask 261120  }
 0x107   :  { %s568_s13 = smov [#allocation2]  }
 0x108   :  { %s295_s14 = sshll.u32 %s568_s13, 4  ;;  %s296_s14 = int_to_ptr.vmem [resolvable:$true] %s295_s14 }
 0x109   :  { %s541_s4 = scalar_lea.vmem %s296_s14, 512  ;;  %p546_p9 = scmp.lt.s32.totalorder %s296_s14, %s296_s14 }
 0x10a   :  { %p542_p8 = scmp.ne.s32.totalorder %s296_s14, %s541_s4  ;;  %p547_p10 = scmp.lt.s32.totalorder %s541_s4, %s541_s4 }
 0x10c   :  { %p548_p11 = por %p547_p10, %p546_p9 }
 0x10e   :  { %p549_p12 = pnand %p548_p11, %p542_p8 }
 0x15c   :  { %v352_v24 = vpop.f32.mrb[0].mxu0 }
 0x15d   :  { %v353_v25 = vpop.f32.mrb[1].mxu0 }
 0x15e   :  { %v354_v26 = vadd.f32 %v353_v25, %v352_v24 }
 0x160   :  { %203 = vst.msk [vmem:[#allocation2] sm:$0xff] %vm202_vm1, %v354_v26  ;;  %v355_v27 = vpop.f32.mrb[2].mxu0 }
 0x161   :  { %v356_v28 = vpop.f32.mrb[3].mxu0 }
 0x162   :  { %v357_v29 = vadd.f32 %v356_v28, %v355_v27 }
 0x164   :  { %204 = vst.msk [vmem:[#allocation2 + $0x8] sm:$0xff] %vm202_vm1, %v357_v29  ;;  %v358_v30 = vpop.f32.mrb[4].mxu0 }
 0x165   :  { %v359_v31 = vpop.f32.mrb[5].mxu0 }
 0x166   :  { %v360_v32 = vadd.f32 %v359_v31, %v358_v30 }
 0x168   :  { %205 = vst.msk [vmem:[#allocation2 + $0x10] sm:$0xff] %vm202_vm1, %v360_v32  ;;  %v361_v33 = vpop.f32.mrb[6].mxu0 }
 0x169   :  { %v362_v34 = vpop.f32.mrb[7].mxu0 }
 0x16a   :  { %v363_v35 = vadd.f32 %v362_v34, %v361_v33 }
 0x16c   :  { %206 = vst.msk [vmem:[#allocation2 + $0x18] sm:$0xff] %vm202_vm1, %v363_v35 }
 0x16d   :  { %552 = shalt.err (!%p549_p12)
}
 0x16e   :  { %s553_s17 = scalar_lea.hbm %s749_s3, 512 }
 0x16f   :  { %p554_p13 = scmp.ne.s32.totalorder %s749_s3, %s553_s17  ;;  %p557_p0 = scmp.lt.u32.totalorder %s553_s17, %s749_s3 }
 0x171   :  { %p559_p1 = pnand %p557_p0, %p554_p13 }
 0x173   :  { %562 = shalt.err (!%p559_p1)
}
 0x174   :  { %s569_s22 = smov 128   ;;  %s570_s23 = smov 8  }
 0x175   :  { %301 = dma.vmem_to_hbm [thread:$0]  %s296_s14, 512, %s749_s3, [#allocation3], %s569_s22, %s569_s22, %s570_s23  }
 0x176   :  { %563 = dma.done.wait [#allocation3], 512  }
 0x177   :  { %564 = vsyncadd [#allocation3], 4294966784 }
 0x178   :  { %565 = dma.done.wait [#allocation5], 16  }
 0x179   :  { %566 = vsyncadd [#allocation5], 4294967280 }
 0x17a   :  { %318 = vsyncpa [#allocation3], 1 }
 0x17b   :  { %319 = vsyncpa [#allocation5], 1 }

</bundles_post_ra>
